<compile_context>
chip_gen: v7x
topology: tpu7x:2x2x1
jax: 0.10.0
libtpu: 0.0.40
codegen_flags: <defaults>
</compile_context>

<pallas_src>
import jax
import jax.numpy as jnp
from jax import lax
from jax.experimental import pallas as pl
from jax.experimental.pallas import tpu as pltpu

_NORM_EPS_6D = 1e-12   # torch.nn.functional.normalize default eps (r6d2mat)
# TODO(synk): confirm 3d eps against the target deep3dmap/pytorch3d version
# (F.normalize default is 1e-6 in some releases; 1e-5 kept to match prior ref).
_NORM_EPS_3D = 1e-5
_EPS6_SQ = _NORM_EPS_6D * _NORM_EPS_6D   # 1e-24 (normal f32; rsqrt -> 1e12)
_EPS3_SQ = _NORM_EPS_3D * _NORM_EPS_3D   # 1e-10

_CHUNK = 8            # sublanes per inner compute chunk: one (8,128) vreg / value
_MAX_SUBLANES = 256   # sublanes per grid step (256*128 = 32768 poses per step)


def _round_up(x, m):
    return (x + m - 1) // m * m


def _cdiv(a, b):
    return -(-a // b)


def _for_each_chunk(ts, chunk_fn):
    """Run chunk_fn(sl) over 8-sublane windows of a (C, ts, 128) block."""
    if ts % _CHUNK == 0:
        nchunks, cs = ts // _CHUNK, _CHUNK
    else:
        nchunks, cs = 1, ts          # small block (ts < 8): single partial chunk

    if nchunks == 1:
        chunk_fn(pl.ds(0, cs))
    else:
        def body(p, carry):
            chunk_fn(pl.ds(pl.multiple_of(p * cs, cs), cs))
            return carry
        lax.fori_loop(0, nchunks, body, 0)


def _pose6d_kernel(e_ref, o_ref):
    # e_ref: (9, TS, 128)  rows 0-2 = t, rows 3-5 = a1, rows 6-8 = a2
    # o_ref: (12, TS, 128) row-major (3, 4) pose per (sublane, lane) slot
    def chunk(sl):
        t0 = e_ref[0, sl, :]
        t1 = e_ref[1, sl, :]
        t2 = e_ref[2, sl, :]
        a10 = e_ref[3, sl, :]
        a11 = e_ref[4, sl, :]
        a12 = e_ref[5, sl, :]
        a20 = e_ref[6, sl, :]
        a21 = e_ref[7, sl, :]
        a22 = e_ref[8, sl, :]

        # b1 = normalize(a1)
        inv1 = lax.rsqrt(jnp.maximum(a10 * a10 + a11 * a11 + a12 * a12, _EPS6_SQ))
        b10 = a10 * inv1
        b11 = a11 * inv1
        b12 = a12 * inv1

        # b2 = normalize(a2 - <b1, a2> * b1)
        d = b10 * a20 + b11 * a21 + b12 * a22
        c0 = a20 - d * b10
        c1 = a21 - d * b11
        c2 = a22 - d * b12
        inv2 = lax.rsqrt(jnp.maximum(c0 * c0 + c1 * c1 + c2 * c2, _EPS6_SQ))
        b20 = c0 * inv2
        b21 = c1 * inv2
        b22 = c2 * inv2

        # b3 = b1 x b2 (component-wise, no concatenate)
        b30 = b11 * b22 - b12 * b21
        b31 = b12 * b20 - b10 * b22
        b32 = b10 * b21 - b11 * b20

        # pose row i = [b_{i+1}, t_i]; row-major flatten into 12 output rows.
        o_ref[0, sl, :] = b10
        o_ref[1, sl, :] = b11
        o_ref[2, sl, :] = b12
        o_ref[3, sl, :] = t0
        o_ref[4, sl, :] = b20
        o_ref[5, sl, :] = b21
        o_ref[6, sl, :] = b22
        o_ref[7, sl, :] = t1
        o_ref[8, sl, :] = b30
        o_ref[9, sl, :] = b31
        o_ref[10, sl, :] = b32
        o_ref[11, sl, :] = t2

    _for_each_chunk(e_ref.shape[1], chunk)


def _pose3d_kernel(e_ref, o_ref):
    # e_ref: (3, TS, 128)  rows 0-2 = t (camera position)
    # o_ref: (12, TS, 128) row-major (3, 4) pose per slot
    # pytorch3d-style look_at_rotation with at=(0,0,0), up=(0,0,1).
    def chunk(sl):
        t0 = e_ref[0, sl, :]
        t1 = e_ref[1, sl, :]
        t2 = e_ref[2, sl, :]

        # z = normalize(at - camera_position) = normalize(-t)
        invz = lax.rsqrt(jnp.maximum(t0 * t0 + t1 * t1 + t2 * t2, _EPS3_SQ))
        z0 = -t0 * invz
        z1 = -t1 * invz
        z2 = -t2 * invz

        # x = normalize(up x z); up=(0,0,1) -> raw x = (-z1, z0, 0), so x2 == 0.
        invx = lax.rsqrt(jnp.maximum(z0 * z0 + z1 * z1, _EPS3_SQ))
        x0 = -z1 * invx
        x1 = z0 * invx

        # y = normalize(z x x) with x2 == 0.
        yr0 = -z2 * x1
        yr1 = z2 * x0
        yr2 = z0 * x1 - z1 * x0
        invy = lax.rsqrt(jnp.maximum(yr0 * yr0 + yr1 * yr1 + yr2 * yr2, _EPS3_SQ))
        y0 = yr0 * invy
        y1 = yr1 * invy
        y2 = yr2 * invy

        # Degenerate fallback (pytorch3d): if all |x| <= 5e-3, x = normalize(y x z).
        # x2 is exactly 0, so only x0/x1 participate in the closeness check.
        is_close = (jnp.abs(x0) <= 5e-3) & (jnp.abs(x1) <= 5e-3)
        xr0 = y1 * z2 - y2 * z1
        xr1 = y2 * z0 - y0 * z2
        xr2 = y0 * z1 - y1 * z0
        invr = lax.rsqrt(jnp.maximum(xr0 * xr0 + xr1 * xr1 + xr2 * xr2, _EPS3_SQ))
        x0 = jnp.where(is_close, xr0 * invr, x0)
        x1 = jnp.where(is_close, xr1 * invr, x1)
        x2 = jnp.where(is_close, xr2 * invr, jnp.zeros_like(x0))

        # R = stack([x, y, z], rows).transpose(1, 2) -> columns are x, y, z
        # pose row i = [x_i, y_i, z_i, t_i]
        o_ref[0, sl, :] = x0
        o_ref[1, sl, :] = y0
        o_ref[2, sl, :] = z0
        o_ref[3, sl, :] = t0
        o_ref[4, sl, :] = x1
        o_ref[5, sl, :] = y1
        o_ref[6, sl, :] = z1
        o_ref[7, sl, :] = t1
        o_ref[8, sl, :] = x2
        o_ref[9, sl, :] = y2
        o_ref[10, sl, :] = z2
        o_ref[11, sl, :] = t2

    _for_each_chunk(e_ref.shape[1], chunk)


def _run_pose_kernel(kernel, embed_t):
    """embed_t: (C, N) lane-dense embedding; returns (12, N) lane-dense poses."""
    c, n = embed_t.shape
    # Pad only the <128-lane remainder (at most 127 columns), never a full slab.
    n_pad = _round_up(n, 128)
    if n_pad != n:
        embed_t = jnp.pad(embed_t, ((0, 0), (0, n_pad - n)))
    s = n_pad // 128
    # Each component row becomes dense (s, 128) planes -> full-vreg math in-kernel.
    planes = embed_t.reshape(c, s, 128)

    if s <= _CHUNK:
        ts = s                        # single small block (second-to-last == full dim)
    else:
        # Keep >=2 grid steps for v7x 2-TC sharding; cap per-step sublanes so the
        # double-buffered footprint stays ~5.5 MB << scoped VMEM on v5e/v6e/v7x.
        ts = min(_MAX_SUBLANES, _round_up(_cdiv(s, 2), _CHUNK))
    grid = _cdiv(s, ts)               # last block may be partial; pipeline clips it

    out = pl.pallas_call(
        kernel,
        out_shape=jax.ShapeDtypeStruct((12, s, 128), embed_t.dtype),
        grid=(grid,),
        in_specs=[pl.BlockSpec((c, ts, 128), lambda i: (0, i, 0))],
        out_specs=pl.BlockSpec((12, ts, 128), lambda i: (0, i, 0)),
        compiler_params=pltpu.CompilerParams(
            dimension_semantics=("parallel",)),
    )(planes)

    out = out.reshape(12, n_pad)
    return out if n_pad == n else out[:, :n]


def pose_parameters_forward(poses_embed, pose_mode, pose_indices=None):
    """Equivalent of PoseParameters.forward().

    poses_embed: (N, 9) for '6d', (N, 3) for '3d'  (float32)
    returns     : (N, 3, 4) poses, or poses[pose_indices] if indices given.
    """
    # TODO(synk): store the learned parameter lane-dense as (C, N) at the model
    # level and let consumers accept the (12, K) slab — that removes both
    # wrapper-side HBM transpose passes entirely.
    embed_t = poses_embed.T  # (C, N) lane-dense layout for the kernel

    # Gather selected poses BEFORE the kernel: compute + output HBM traffic
    # become O(K) instead of O(N). Per-pose math is independent, so this is
    # exactly poses[pose_indices].
    if pose_indices is not None:
        embed_t = embed_t[:, pose_indices]

    if pose_mode == "6d":
        out = _run_pose_kernel(_pose6d_kernel, embed_t)
    elif pose_mode == "3d":
        out = _run_pose_kernel(_pose3d_kernel, embed_t)
    else:
        raise NotImplementedError(pose_mode)

    k = out.shape[1]
    return out.reshape(3, 4, k).transpose(2, 0, 1)  # (K, 3, 4)


# ----------------------------- pure-JAX references -----------------------------
def _ref_6d(embed):
    t, a1, a2 = embed[:, :3], embed[:, 3:6], embed[:, 6:9]
    nrm = lambda v, e: v / jnp.maximum(jnp.linalg.norm(v, axis=-1, keepdims=True), e)
    b1 = nrm(a1, _NORM_EPS_6D)
    b2 = nrm(a2 - jnp.sum(b1 * a2, -1, keepdims=True) * b1, _NORM_EPS_6D)
    b3 = jnp.cross(b1, b2)
    R = jnp.stack([b1, b2, b3], axis=-2)
    return jnp.concatenate([R, t[..., None]], axis=-1)


def _ref_3d(embed):
    t = embed[:, :3]
    up = jnp.broadcast_to(jnp.array([0.0, 0.0, 1.0], embed.dtype), t.shape)
    nrm = lambda v, e: v / jnp.maximum(jnp.linalg.norm(v, axis=-1, keepdims=True), e)
    z = nrm(-t, _NORM_EPS_3D)
    x = nrm(jnp.cross(up, z), _NORM_EPS_3D)
    y = nrm(jnp.cross(z, x), _NORM_EPS_3D)
    close = jnp.all(jnp.abs(x) <= 5e-3, axis=-1, keepdims=True)
    x = jnp.where(close, nrm(jnp.cross(y, z), _NORM_EPS_3D), x)
    R = jnp.stack([x, y, z], axis=-1)
    return jnp.concatenate([R, t[..., None]], axis=-1)


if __name__ == "__main__":
    key = jax.random.PRNGKey(0)
    k6, k3, k6b = jax.random.split(key, 3)

    # Parameter shapes follow PoseParameters.__init__: (length, 9) for '6d',
    # (length, 3) for '3d'. Deterministic random init of the same shapes
    # (the canonical t=[0,0,1] init is geometrically degenerate for '3d').
    length = 8
    poses_embed_6d = jax.random.normal(k6, (length, 9), dtype=jnp.float32)
    poses_embed_3d = jax.random.normal(k3, (length, 3), dtype=jnp.float32)
    idx = jnp.array([3, 0, 5], dtype=jnp.int32)

    # 6d mode, full forward (pose_indices=None)
    poses6 = jax.block_until_ready(pose_parameters_forward(poses_embed_6d, "6d"))
    assert poses6.shape == (length, 3, 4)
    assert jnp.allclose(poses6, _ref_6d(poses_embed_6d), atol=1e-5)

    # 6d mode, indexed forward (gather before the kernel)
    poses6_sel = jax.block_until_ready(
        pose_parameters_forward(poses_embed_6d, "6d", idx)
    )
    assert poses6_sel.shape == (3, 3, 4)
    assert jnp.allclose(poses6_sel, _ref_6d(poses_embed_6d)[idx], atol=1e-5)

    # 3d mode, full forward
    poses3 = jax.block_until_ready(pose_parameters_forward(poses_embed_3d, "3d"))
    assert poses3.shape == (length, 3, 4)
    assert jnp.allclose(poses3, _ref_3d(poses_embed_3d), atol=1e-5)

    # 3d mode, indexed forward
    poses3_sel = jax.block_until_ready(
        pose_parameters_forward(poses_embed_3d, "3d", idx)
    )
    assert poses3_sel.shape == (3, 3, 4)
    assert jnp.allclose(poses3_sel, _ref_3d(poses_embed_3d)[idx], atol=1e-5)

    # Larger pose count (still tiny data) to exercise the multi-plane path:
    # 128-lane pad remainder, >=2 grid steps, inner 8-sublane fori_loop, and
    # the clipped partial final block.
    big = 2200
    poses_embed_big = jax.random.normal(k6b, (big, 9), dtype=jnp.float32)
    poses_big = jax.block_until_ready(pose_parameters_forward(poses_embed_big, "6d"))
    assert poses_big.shape == (big, 3, 4)
    assert jnp.allclose(poses_big, _ref_6d(poses_embed_big), atol=1e-5)

    print("KERNEL_OK")
</pallas_src>

<mosaic_0001>
module attributes {stable_mosaic.version = 11 : i64} {
  func.func @_pose6d_kernel(%arg0: i32, %arg1: memref<9x1x128xf32, #tpu.memory_space<vmem>>, %arg2: memref<12x1x128xf32, #tpu.memory_space<vmem>>) attributes {dimension_semantics = [#tpu.dimension_semantics<parallel>], iteration_bounds = array<i64: 1>, scalar_prefetch = 0 : i64, scratch_operands = 0 : i64, tpu.core_type = #tpu.core_type<tc>, window_params = [{transform_indices = @transform_0, window_bounds = array<i64: 9, 1, 128>}, {transform_indices = @transform_1, window_bounds = array<i64: 12, 1, 128>}]} {
    %c0 = arith.constant 0 : index
    %c0_0 = arith.constant 0 : index
    %c0_1 = arith.constant 0 : index
    %0 = vector.load %arg1[%c0, %c0_0, %c0_1] : memref<9x1x128xf32, #tpu.memory_space<vmem>>, vector<1x1x128xf32>
    %1 = vector.shape_cast %0 : vector<1x1x128xf32> to vector<1x128xf32>
    %c1 = arith.constant 1 : index
    %c0_2 = arith.constant 0 : index
    %c0_3 = arith.constant 0 : index
    %2 = vector.load %arg1[%c1, %c0_2, %c0_3] : memref<9x1x128xf32, #tpu.memory_space<vmem>>, vector<1x1x128xf32>
    %3 = vector.shape_cast %2 : vector<1x1x128xf32> to vector<1x128xf32>
    %c2 = arith.constant 2 : index
    %c0_4 = arith.constant 0 : index
    %c0_5 = arith.constant 0 : index
    %4 = vector.load %arg1[%c2, %c0_4, %c0_5] : memref<9x1x128xf32, #tpu.memory_space<vmem>>, vector<1x1x128xf32>
    %5 = vector.shape_cast %4 : vector<1x1x128xf32> to vector<1x128xf32>
    %c3 = arith.constant 3 : index
    %c0_6 = arith.constant 0 : index
    %c0_7 = arith.constant 0 : index
    %6 = vector.load %arg1[%c3, %c0_6, %c0_7] : memref<9x1x128xf32, #tpu.memory_space<vmem>>, vector<1x1x128xf32>
    %7 = vector.shape_cast %6 : vector<1x1x128xf32> to vector<1x128xf32>
    %c4 = arith.constant 4 : index
    %c0_8 = arith.constant 0 : index
    %c0_9 = arith.constant 0 : index
    %8 = vector.load %arg1[%c4, %c0_8, %c0_9] : memref<9x1x128xf32, #tpu.memory_space<vmem>>, vector<1x1x128xf32>
    %9 = vector.shape_cast %8 : vector<1x1x128xf32> to vector<1x128xf32>
    %c5 = arith.constant 5 : index
    %c0_10 = arith.constant 0 : index
    %c0_11 = arith.constant 0 : index
    %10 = vector.load %arg1[%c5, %c0_10, %c0_11] : memref<9x1x128xf32, #tpu.memory_space<vmem>>, vector<1x1x128xf32>
    %11 = vector.shape_cast %10 : vector<1x1x128xf32> to vector<1x128xf32>
    %c6 = arith.constant 6 : index
    %c0_12 = arith.constant 0 : index
    %c0_13 = arith.constant 0 : index
    %12 = vector.load %arg1[%c6, %c0_12, %c0_13] : memref<9x1x128xf32, #tpu.memory_space<vmem>>, vector<1x1x128xf32>
    %13 = vector.shape_cast %12 : vector<1x1x128xf32> to vector<1x128xf32>
    %c7 = arith.constant 7 : index
    %c0_14 = arith.constant 0 : index
    %c0_15 = arith.constant 0 : index
    %14 = vector.load %arg1[%c7, %c0_14, %c0_15] : memref<9x1x128xf32, #tpu.memory_space<vmem>>, vector<1x1x128xf32>
    %15 = vector.shape_cast %14 : vector<1x1x128xf32> to vector<1x128xf32>
    %c8 = arith.constant 8 : index
    %c0_16 = arith.constant 0 : index
    %c0_17 = arith.constant 0 : index
    %16 = vector.load %arg1[%c8, %c0_16, %c0_17] : memref<9x1x128xf32, #tpu.memory_space<vmem>>, vector<1x1x128xf32>
    %17 = vector.shape_cast %16 : vector<1x1x128xf32> to vector<1x128xf32>
    %18 = arith.mulf %7, %7 : vector<1x128xf32>
    %19 = arith.mulf %9, %9 : vector<1x128xf32>
    %20 = arith.addf %18, %19 : vector<1x128xf32>
    %21 = arith.mulf %11, %11 : vector<1x128xf32>
    %22 = arith.addf %20, %21 : vector<1x128xf32>
    %cst = arith.constant 1.000000e-24 : f32
    %23 = vector.broadcast %cst : f32 to vector<1x128xf32>
    %24 = arith.maximumf %22, %23 : vector<1x128xf32>
    %25 = math.rsqrt %24 : vector<1x128xf32>
    %26 = arith.mulf %7, %25 : vector<1x128xf32>
    %27 = arith.mulf %9, %25 : vector<1x128xf32>
    %28 = arith.mulf %11, %25 : vector<1x128xf32>
    %29 = arith.mulf %26, %13 : vector<1x128xf32>
    %30 = arith.mulf %27, %15 : vector<1x128xf32>
    %31 = arith.addf %29, %30 : vector<1x128xf32>
    %32 = arith.mulf %28, %17 : vector<1x128xf32>
    %33 = arith.addf %31, %32 : vector<1x128xf32>
    %34 = arith.mulf %33, %26 : vector<1x128xf32>
    %35 = arith.subf %13, %34 : vector<1x128xf32>
    %36 = arith.mulf %33, %27 : vector<1x128xf32>
    %37 = arith.subf %15, %36 : vector<1x128xf32>
    %38 = arith.mulf %33, %28 : vector<1x128xf32>
    %39 = arith.subf %17, %38 : vector<1x128xf32>
    %40 = arith.mulf %35, %35 : vector<1x128xf32>
    %41 = arith.mulf %37, %37 : vector<1x128xf32>
    %42 = arith.addf %40, %41 : vector<1x128xf32>
    %43 = arith.mulf %39, %39 : vector<1x128xf32>
    %44 = arith.addf %42, %43 : vector<1x128xf32>
    %cst_18 = arith.constant 1.000000e-24 : f32
    %45 = vector.broadcast %cst_18 : f32 to vector<1x128xf32>
    %46 = arith.maximumf %44, %45 : vector<1x128xf32>
    %47 = math.rsqrt %46 : vector<1x128xf32>
    %48 = arith.mulf %35, %47 : vector<1x128xf32>
    %49 = arith.mulf %37, %47 : vector<1x128xf32>
    %50 = arith.mulf %39, %47 : vector<1x128xf32>
    %51 = arith.mulf %27, %50 : vector<1x128xf32>
    %52 = arith.mulf %28, %49 : vector<1x128xf32>
    %53 = arith.subf %51, %52 : vector<1x128xf32>
    %54 = arith.mulf %28, %48 : vector<1x128xf32>
    %55 = arith.mulf %26, %50 : vector<1x128xf32>
    %56 = arith.subf %54, %55 : vector<1x128xf32>
    %57 = arith.mulf %26, %49 : vector<1x128xf32>
    %58 = arith.mulf %27, %48 : vector<1x128xf32>
    %59 = arith.subf %57, %58 : vector<1x128xf32>
    %c0_19 = arith.constant 0 : index
    %c0_20 = arith.constant 0 : index
    %c0_21 = arith.constant 0 : index
    %60 = vector.load %arg2[%c0_19, %c0_20, %c0_21] : memref<12x1x128xf32, #tpu.memory_space<vmem>>, vector<1x1x128xf32>
    %61 = vector.shape_cast %60 : vector<1x1x128xf32> to vector<1x128xf32>
    %62 = vector.shape_cast %26 : vector<1x128xf32> to vector<1x1x128xf32>
    tpu.vector_store %arg2[%c0_19, %c0_20, %c0_21], %62 {strides = array<i32>} : memref<12x1x128xf32, #tpu.memory_space<vmem>>, vector<1x1x128xf32>,
    %c1_22 = arith.constant 1 : index
    %c0_23 = arith.constant 0 : index
    %c0_24 = arith.constant 0 : index
    %63 = vector.load %arg2[%c1_22, %c0_23, %c0_24] : memref<12x1x128xf32, #tpu.memory_space<vmem>>, vector<1x1x128xf32>
    %64 = vector.shape_cast %63 : vector<1x1x128xf32> to vector<1x128xf32>
    %65 = vector.shape_cast %27 : vector<1x128xf32> to vector<1x1x128xf32>
    tpu.vector_store %arg2[%c1_22, %c0_23, %c0_24], %65 {strides = array<i32>} : memref<12x1x128xf32, #tpu.memory_space<vmem>>, vector<1x1x128xf32>,
    %c2_25 = arith.constant 2 : index
    %c0_26 = arith.constant 0 : index
    %c0_27 = arith.constant 0 : index
    %66 = vector.load %arg2[%c2_25, %c0_26, %c0_27] : memref<12x1x128xf32, #tpu.memory_space<vmem>>, vector<1x1x128xf32>
    %67 = vector.shape_cast %66 : vector<1x1x128xf32> to vector<1x128xf32>
    %68 = vector.shape_cast %28 : vector<1x128xf32> to vector<1x1x128xf32>
    tpu.vector_store %arg2[%c2_25, %c0_26, %c0_27], %68 {strides = array<i32>} : memref<12x1x128xf32, #tpu.memory_space<vmem>>, vector<1x1x128xf32>,
    %c3_28 = arith.constant 3 : index
    %c0_29 = arith.constant 0 : index
    %c0_30 = arith.constant 0 : index
    %69 = vector.load %arg2[%c3_28, %c0_29, %c0_30] : memref<12x1x128xf32, #tpu.memory_space<vmem>>, vector<1x1x128xf32>
    %70 = vector.shape_cast %69 : vector<1x1x128xf32> to vector<1x128xf32>
    %71 = vector.shape_cast %1 : vector<1x128xf32> to vector<1x1x128xf32>
    tpu.vector_store %arg2[%c3_28, %c0_29, %c0_30], %71 {strides = array<i32>} : memref<12x1x128xf32, #tpu.memory_space<vmem>>, vector<1x1x128xf32>,
    %c4_31 = arith.constant 4 : index
    %c0_32 = arith.constant 0 : index
    %c0_33 = arith.constant 0 : index
    %72 = vector.load %arg2[%c4_31, %c0_32, %c0_33] : memref<12x1x128xf32, #tpu.memory_space<vmem>>, vector<1x1x128xf32>
    %73 = vector.shape_cast %72 : vector<1x1x128xf32> to vector<1x128xf32>
    %74 = vector.shape_cast %48 : vector<1x128xf32> to vector<1x1x128xf32>
    tpu.vector_store %arg2[%c4_31, %c0_32, %c0_33], %74 {strides = array<i32>} : memref<12x1x128xf32, #tpu.memory_space<vmem>>, vector<1x1x128xf32>,
    %c5_34 = arith.constant 5 : index
    %c0_35 = arith.constant 0 : index
    %c0_36 = arith.constant 0 : index
    %75 = vector.load %arg2[%c5_34, %c0_35, %c0_36] : memref<12x1x128xf32, #tpu.memory_space<vmem>>, vector<1x1x128xf32>
    %76 = vector.shape_cast %75 : vector<1x1x128xf32> to vector<1x128xf32>
    %77 = vector.shape_cast %49 : vector<1x128xf32> to vector<1x1x128xf32>
    tpu.vector_store %arg2[%c5_34, %c0_35, %c0_36], %77 {strides = array<i32>} : memref<12x1x128xf32, #tpu.memory_space<vmem>>, vector<1x1x128xf32>,
    %c6_37 = arith.constant 6 : index
    %c0_38 = arith.constant 0 : index
    %c0_39 = arith.constant 0 : index
    %78 = vector.load %arg2[%c6_37, %c0_38, %c0_39] : memref<12x1x128xf32, #tpu.memory_space<vmem>>, vector<1x1x128xf32>
    %79 = vector.shape_cast %78 : vector<1x1x128xf32> to vector<1x128xf32>
    %80 = vector.shape_cast %50 : vector<1x128xf32> to vector<1x1x128xf32>
    tpu.vector_store %arg2[%c6_37, %c0_38, %c0_39], %80 {strides = array<i32>} : memref<12x1x128xf32, #tpu.memory_space<vmem>>, vector<1x1x128xf32>,
    %c7_40 = arith.constant 7 : index
    %c0_41 = arith.constant 0 : index
    %c0_42 = arith.constant 0 : index
    %81 = vector.load %arg2[%c7_40, %c0_41, %c0_42] : memref<12x1x128xf32, #tpu.memory_space<vmem>>, vector<1x1x128xf32>
    %82 = vector.shape_cast %81 : vector<1x1x128xf32> to vector<1x128xf32>
    %83 = vector.shape_cast %3 : vector<1x128xf32> to vector<1x1x128xf32>
    tpu.vector_store %arg2[%c7_40, %c0_41, %c0_42], %83 {strides = array<i32>} : memref<12x1x128xf32, #tpu.memory_space<vmem>>, vector<1x1x128xf32>,
    %c8_43 = arith.constant 8 : index
    %c0_44 = arith.constant 0 : index
    %c0_45 = arith.constant 0 : index
    %84 = vector.load %arg2[%c8_43, %c0_44, %c0_45] : memref<12x1x128xf32, #tpu.memory_space<vmem>>, vector<1x1x128xf32>
    %85 = vector.shape_cast %84 : vector<1x1x128xf32> to vector<1x128xf32>
    %86 = vector.shape_cast %53 : vector<1x128xf32> to vector<1x1x128xf32>
    tpu.vector_store %arg2[%c8_43, %c0_44, %c0_45], %86 {strides = array<i32>} : memref<12x1x128xf32, #tpu.memory_space<vmem>>, vector<1x1x128xf32>,
    %c9 = arith.constant 9 : index
    %c0_46 = arith.constant 0 : index
    %c0_47 = arith.constant 0 : index
    %87 = vector.load %arg2[%c9, %c0_46, %c0_47] : memref<12x1x128xf32, #tpu.memory_space<vmem>>, vector<1x1x128xf32>
    %88 = vector.shape_cast %87 : vector<1x1x128xf32> to vector<1x128xf32>
    %89 = vector.shape_cast %56 : vector<1x128xf32> to vector<1x1x128xf32>
    tpu.vector_store %arg2[%c9, %c0_46, %c0_47], %89 {strides = array<i32>} : memref<12x1x128xf32, #tpu.memory_space<vmem>>, vector<1x1x128xf32>,
    %c10 = arith.constant 10 : index
    %c0_48 = arith.constant 0 : index
    %c0_49 = arith.constant 0 : index
    %90 = vector.load %arg2[%c10, %c0_48, %c0_49] : memref<12x1x128xf32, #tpu.memory_space<vmem>>, vector<1x1x128xf32>
    %91 = vector.shape_cast %90 : vector<1x1x128xf32> to vector<1x128xf32>
    %92 = vector.shape_cast %59 : vector<1x128xf32> to vector<1x1x128xf32>
    tpu.vector_store %arg2[%c10, %c0_48, %c0_49], %92 {strides = array<i32>} : memref<12x1x128xf32, #tpu.memory_space<vmem>>, vector<1x1x128xf32>,
    %c11 = arith.constant 11 : index
    %c0_50 = arith.constant 0 : index
    %c0_51 = arith.constant 0 : index
    %93 = vector.load %arg2[%c11, %c0_50, %c0_51] : memref<12x1x128xf32, #tpu.memory_space<vmem>>, vector<1x1x128xf32>
    %94 = vector.shape_cast %93 : vector<1x1x128xf32> to vector<1x128xf32>
    %95 = vector.shape_cast %5 : vector<1x128xf32> to vector<1x1x128xf32>
    tpu.vector_store %arg2[%c11, %c0_50, %c0_51], %95 {strides = array<i32>} : memref<12x1x128xf32, #tpu.memory_space<vmem>>, vector<1x1x128xf32>,
    return
  }
  func.func @transform_0(%arg0: i32) -> (i32, i32, i32) {
    %c0_i32 = arith.constant 0 : i32
    %c0_i32_0 = arith.constant 0 : i32
    %c0_i32_1 = arith.constant 0 : i32
    return %c0_i32, %arg0, %c0_i32_0 : i32, i32, i32
  }
  func.func @transform_1(%arg0: i32) -> (i32, i32, i32) {
    %c0_i32 = arith.constant 0 : i32
    %c0_i32_0 = arith.constant 0 : i32
    %c0_i32_1 = arith.constant 0 : i32
    return %c0_i32, %arg0, %c0_i32_0 : i32, i32, i32
  }
}

</mosaic_0001>

<bundles_post_ra>
// kernel: tpu_custom_call.1
= control target key start
LH: loop header
LB: loop body
LE: loop exit
PB: predicated region body
PF: predicated region fallthrough
CT: control target
= control target key end

     0   :  { %6 = vsyncpa [#allocation3], 0  ;;  %s220_s0 = inlined_call_operand.hbm [shape: f32[9,1,128], index: 0, kind: input, shape index: {}]   ;;  %s221_s1 = inlined_call_operand.hbm [shape: f32[12,1,128], index: 1, kind: output, shape index: {}]  }
   0x1   :  { %7 = vsyncpa [#allocation4], 0  ;;  %s176_s6 = smov [#allocation2]   ;;  %s128_s10 = scalar_lea.hbm %s220_s0, 144 }
   0x2   :  { %s13_s7 = sshll.u32 %s176_s6, 4  ;;  %p129_p0 = scmp.ne.s32.totalorder %s220_s0, %s128_s10  ;;  %s14_s7 = int_to_ptr.vmem [resolvable:$true] %s13_s7 }
   0x3   :  { %p132_p1 = scmp.lt.u32.totalorder %s128_s10, %s220_s0 }
   0x5   :  { %p134_p2 = pnand %p132_p1, %p129_p0 }
   0x7   :  { %137 = shalt.err (!%p134_p2)
}
   0x8   :  { %s138_s15 = scalar_lea.vmem %s14_s7, 144  ;;  %s142_s16 = scalar_lea.vmem %s14_s7, 160 }
   0x9   :  { %p139_p3 = scmp.ne.s32.totalorder %s14_s7, %s138_s15  ;;  %p143_p4 = scmp.lt.s32.totalorder %s14_s7, %s14_s7 }
   0xa   :  { %p144_p5 = scmp.lt.s32.totalorder %s142_s16, %s138_s15 }
   0xc   :  { %p145_p6 = por %p144_p5, %p143_p4 }
   0xe   :  { %p146_p7 = pnand %p145_p6, %p139_p3 }
  0x10   :  { %149 = shalt.err (!%p146_p7)
}
  0x11   :  { %s177_s17 = smov 16   ;;  %s178_s18 = smov 1  }
  0x12   :  { %19 = dma.hbm_to_vmem [thread:$0]  %s220_s0, 144, %s14_s7, [#allocation3], %s177_s17, %s177_s17, %s178_s18  }
  0x13   :  { %172 = dma.done.wait [#allocation3], 144  }
  0x14   :  { %173 = vsyncadd [#allocation3], 4294967152  ;;  %v29_v0 = vld [vmem:[#allocation2 + $0x3] sm:$0x1]  ;;  %v31_v1 = vld [vmem:[#allocation2 + $0x4] sm:$0x1] }
  0x15   :  { %v33_v2 = vld [vmem:[#allocation2 + $0x5] sm:$0x1]  ;;  %v40_v3 = vmul.f32 %v29_v0, %v29_v0  ;;  %v41_v4 = vmul.f32 %v31_v1, %v31_v1  ;;  %v23_v6 = vld [vmem:[#allocation2] sm:$0x1]  ;;  %v25_v7 = vld [vmem:[#allocation2 + $0x1] sm:$0x1] }
  0x16   :  { %v43_v5 = vmul.f32 %v33_v2, %v33_v2  ;;  %86 = vst [vmem:[#allocation5 + $0x3] sm:$0x1] %v23_v6  ;;  %v27_v8 = vld [vmem:[#allocation2 + $0x2] sm:$0x1]  ;;  %94 = vst [vmem:[#allocation5 + $0x7] sm:$0x1] %v25_v7 }
  0x17   :  { %v42_v9 = vadd.f32 %v41_v4, %v40_v3  ;;  %102 = vst [vmem:[#allocation5 + $0xb] sm:$0x1] %v27_v8  ;;  %v35_v13 = vld [vmem:[#allocation2 + $0x6] sm:$0x1]  ;;  %v37_v14 = vld [vmem:[#allocation2 + $0x7] sm:$0x1] }
  0x18   :  { %v39_v15 = vld [vmem:[#allocation2 + $0x8] sm:$0x1]  ;;  %s179_s0 = smov [#allocation5]  }
  0x19   :  { %v44_v10 = vadd.f32 %v43_v5, %v42_v9  ;;  %s108_s21 = sshll.u32 %s179_s0, 4  ;;  %s109_s21 = int_to_ptr.vmem [resolvable:$true] %s108_s21 }
  0x1a   :  { %s150_s22 = scalar_lea.vmem %s109_s21, 192  ;;  %p155_p9 = scmp.lt.s32.totalorder %s109_s21, %s109_s21 }
  0x1b   :  { %v45_v11 = vmax.f32 %v44_v10, 1e-24  ;;  %p151_p8 = scmp.ne.s32.totalorder %s109_s21, %s150_s22  ;;  %p156_p10 = scmp.lt.s32.totalorder %s150_s22, %s150_s22 }
  0x1d   :  { %124 = vrsqrt.f32 %v45_v11  ;;  %p157_p11 = por %p156_p10, %p155_p9 }
  0x1f   :  { %p158_p12 = pnand %p157_p11, %p151_p8 }
  0x27   :  { %v125_v12 = vpop.eup %124 }
  0x28   :  { %v47_v16 = vmul.f32 %v125_v12, %v29_v0  ;;  %v48_v17 = vmul.f32 %v125_v12, %v31_v1  ;;  %v49_v18 = vmul.f32 %v125_v12, %v33_v2 }
  0x2a   :  { %80 = vst [vmem:[#allocation5] sm:$0x1] %v47_v16  ;;  %82 = vst [vmem:[#allocation5 + $0x1] sm:$0x1] %v48_v17  ;;  %v50_v19 = vmul.f32 %v47_v16, %v35_v13  ;;  %v51_v20 = vmul.f32 %v48_v17, %v37_v14  ;;  %v53_v21 = vmul.f32 %v49_v18, %v39_v15 }
  0x2b   :  { %84 = vst [vmem:[#allocation5 + $0x2] sm:$0x1] %v49_v18 }
  0x2c   :  { %v52_v22 = vadd.f32 %v51_v20, %v50_v19 }
  0x2e   :  { %v54_v23 = vadd.f32 %v53_v21, %v52_v22 }
  0x30   :  { %v55_v24 = vmul.f32 %v54_v23, %v47_v16  ;;  %v57_v25 = vmul.f32 %v54_v23, %v48_v17  ;;  %v59_v26 = vmul.f32 %v54_v23, %v49_v18 }
  0x32   :  { %v56_v27 = vsub.f32 %v35_v13, %v55_v24  ;;  %v58_v28 = vsub.f32 %v37_v14, %v57_v25  ;;  %v60_v29 = vsub.f32 %v39_v15, %v59_v26 }
  0x34   :  { %v61_v30 = vmul.f32 %v56_v27, %v56_v27  ;;  %v62_v31 = vmul.f32 %v58_v28, %v58_v28  ;;  %v64_v32 = vmul.f32 %v60_v29, %v60_v29 }
  0x36   :  { %v63_v33 = vadd.f32 %v62_v31, %v61_v30 }
  0x38   :  { %v65_v34 = vadd.f32 %v64_v32, %v63_v33 }
  0x3a   :  { %v66_v35 = vmax.f32 %v65_v34, 1e-24 }
  0x3c   :  { %126 = vrsqrt.f32 %v66_v35 }
  0x46   :  { %v127_v36 = vpop.eup %126 }
  0x47   :  { %v68_v37 = vmul.f32 %v127_v36, %v56_v27  ;;  %v69_v38 = vmul.f32 %v127_v36, %v58_v28  ;;  %v70_v39 = vmul.f32 %v127_v36, %v60_v29 }
  0x49   :  { %88 = vst [vmem:[#allocation5 + $0x4] sm:$0x1] %v68_v37  ;;  %90 = vst [vmem:[#allocation5 + $0x5] sm:$0x1] %v69_v38  ;;  %v71_v40 = vmul.f32 %v70_v39, %v48_v17  ;;  %v72_v41 = vmul.f32 %v69_v38, %v49_v18  ;;  %v74_v42 = vmul.f32 %v68_v37, %v49_v18 }
  0x4a   :  { %92 = vst [vmem:[#allocation5 + $0x6] sm:$0x1] %v70_v39  ;;  %v75_v43 = vmul.f32 %v70_v39, %v47_v16  ;;  %v77_v44 = vmul.f32 %v69_v38, %v47_v16  ;;  %v78_v45 = vmul.f32 %v68_v37, %v48_v17 }
  0x4b   :  { %v73_v46 = vsub.f32 %v71_v40, %v72_v41 }
  0x4c   :  { %v76_v47 = vsub.f32 %v74_v42, %v75_v43  ;;  %v79_v48 = vsub.f32 %v77_v44, %v78_v45 }
  0x4d   :  { %96 = vst [vmem:[#allocation5 + $0x8] sm:$0x1] %v73_v46 }
  0x4e   :  { %98 = vst [vmem:[#allocation5 + $0x9] sm:$0x1] %v76_v47  ;;  %100 = vst [vmem:[#allocation5 + $0xa] sm:$0x1] %v79_v48 }
  0x4f   :  { %161 = shalt.err (!%p158_p12)
}
  0x50   :  { %s162_s25 = scalar_lea.hbm %s221_s1, 192 }
  0x51   :  { %p163_p13 = scmp.ne.s32.totalorder %s221_s1, %s162_s25  ;;  %p166_p0 = scmp.lt.u32.totalorder %s162_s25, %s221_s1 }
  0x53   :  { %p168_p1 = pnand %p166_p0, %p163_p13 }
  0x55   :  { %171 = shalt.err (!%p168_p1)
}
  0x56   :  { %114 = dma.vmem_to_hbm [thread:$0]  %s109_s21, 192, %s221_s1, [#allocation4], %s177_s17, %s177_s17, %s178_s18  }
  0x57   :  { %174 = dma.done.wait [#allocation4], 192  }
  0x58   :  { %175 = vsyncadd [#allocation4], 4294967104 }
  0x59   :  { %118 = vsyncpa [#allocation3], 1 }
  0x5a   :  { %119 = vsyncpa [#allocation4], 1 }

</bundles_post_ra>
